<compile_context>
chip_gen: v6e
topology: v6e:2x2x1
jax: 0.10.0
libtpu: 0.0.40
codegen_flags: <defaults>
</compile_context>

<pallas_src>
import jax
import jax.numpy as jnp
from jax.experimental import pallas as pl
from jax.experimental.pallas import tpu as pltpu

# --- small config consistent with the module's forward ---
BATCH = 2          # configs.batchsize
TIMESTEP = 8       # configs.timestep
NUM_FACTOR = 16    # num_factor
EMB_DIM = 32       # configs.Embedding_size
K_SIZE = 15        # kernel size; padding=7 makes the residual add shape-valid
PAD = 7

HIGHEST = jax.lax.Precision.HIGHEST   # full-f32 MXU passes (kernel + reference)


# --------------------------------------------------------------------------
# Kernel: two lane-dense MXU matmuls + ReLU + residual add.
# --------------------------------------------------------------------------
def cnn3_kernel(x_ref, w1_ref, b1_ref, w2_ref, b2_ref, out_ref):
    # x_ref: (B, T*F)   w1_ref/w2_ref: (T*F, T*E)   b1_ref/b2_ref: (1, T*E)
    x = x_ref[...]
    emb = jnp.dot(x, w1_ref[...], precision=HIGHEST,
                  preferred_element_type=jnp.float32) + b1_ref[...]
    conv = jnp.dot(x, w2_ref[...], precision=HIGHEST,
                   preferred_element_type=jnp.float32) + b2_ref[...]
    out_ref[...] = jnp.maximum(conv, 0.0) + emb


# --------------------------------------------------------------------------
# Weight-only precompute (runs once inside the jitted wrapper).
# --------------------------------------------------------------------------
def _conv_toeplitz(w_conv, T, E, pad):
    """M[t*E+e, t'*E+e'] = w_conv[t-t'+pad, e-e'+pad] (zero outside kernel)."""
    K = w_conv.shape[0]
    t = jnp.arange(T)
    e = jnp.arange(E)
    di = t[:, None] - t[None, :] + pad                      # (T, T)
    dj = e[:, None] - e[None, :] + pad                      # (E, E)
    ok = (((di >= 0) & (di < K))[:, :, None, None]
          & ((dj >= 0) & (dj < K))[None, None, :, :])       # (T, T, E, E)
    w = w_conv[jnp.clip(di, 0, K - 1)[:, :, None, None],
               jnp.clip(dj, 0, K - 1)[None, None, :, :]]    # [t, t', e, e']
    m = jnp.where(ok, w, 0.0).transpose(0, 2, 1, 3)         # [t, e, t', e']
    return m.reshape(T * E, T * E)


def _fold_operators(w_emb, b_emb, w_conv, b_conv, T):
    """Build the two lane-dense operators consumed by the kernel."""
    E = w_emb.shape[1]
    M = _conv_toeplitz(w_conv, T, E, PAD)                        # (T*E, T*E)
    W1 = jnp.kron(jnp.eye(T, dtype=w_emb.dtype), w_emb)          # (T*F, T*E)
    b1 = jnp.tile(b_emb, (1, T))                                 # (1, T*E)
    W2 = jnp.dot(W1, M, precision=HIGHEST)                       # fold emb ∘ conv
    b2 = jnp.dot(b1, M, precision=HIGHEST) + b_conv[0]           # (1, T*E)
    return W1, b1, W2, b2


@jax.jit
def cnn3_forward(x, w_emb, b_emb, w_conv, b_conv):
    B, T, F = x.shape
    E = w_emb.shape[1]
    W1, b1, W2, b2 = _fold_operators(w_emb, b_emb, w_conv, b_conv, T)

    out_flat = pl.pallas_call(
        cnn3_kernel,
        out_shape=jax.ShapeDtypeStruct((B, T * E), jnp.float32),
        in_specs=[
            pl.BlockSpec(memory_space=pltpu.MemorySpace.VMEM),   # x_flat  (B, T*F)
            pl.BlockSpec(memory_space=pltpu.MemorySpace.VMEM),   # W1      (T*F, T*E)
            pl.BlockSpec(memory_space=pltpu.MemorySpace.VMEM),   # b1      (1, T*E)
            pl.BlockSpec(memory_space=pltpu.MemorySpace.VMEM),   # W2      (T*F, T*E)
            pl.BlockSpec(memory_space=pltpu.MemorySpace.VMEM),   # b2      (1, T*E)
        ],
        out_specs=pl.BlockSpec(memory_space=pltpu.MemorySpace.VMEM),
    )(x.reshape(B, T * F), W1, b1, W2, b2)

    return out_flat.reshape(B, T, E)


# --------------------------------------------------------------------------
# Pure-JAX reference (mirrors the PyTorch forward).
# --------------------------------------------------------------------------
def cnn3_reference(x, w_emb, b_emb, w_conv, b_conv):
    emb = jnp.einsum("btf,fe->bte", x, w_emb, precision=HIGHEST) + b_emb
    img = emb[:, None, :, :]                                     # (B, 1, T, E)
    conv = jax.lax.conv_general_dilated(
        img, w_conv[None, None, :, :], window_strides=(1, 1),
        padding=[(PAD, PAD), (PAD, PAD)],
        dimension_numbers=("NCHW", "OIHW", "NCHW"),
        precision=HIGHEST)
    conv = conv + b_conv[0]
    conv = jnp.maximum(conv, 0.0)[:, 0, :, :]                    # squeeze(1)
    return conv + emb


if __name__ == "__main__":
    key = jax.random.PRNGKey(0)
    kx, kw, kb, kcw, kcb = jax.random.split(key, 5)

    x = jax.random.normal(kx, (BATCH, TIMESTEP, NUM_FACTOR), dtype=jnp.float32)
    # embedding Linear params (stored already transposed: (in, out))
    w_emb = jax.random.normal(kw, (NUM_FACTOR, EMB_DIM), dtype=jnp.float32) * 0.1
    b_emb = jax.random.normal(kb, (1, EMB_DIM), dtype=jnp.float32) * 0.1
    # Conv2d(1, 1, 15) params
    w_conv = jax.random.normal(kcw, (K_SIZE, K_SIZE), dtype=jnp.float32) * 0.05
    b_conv = jax.random.normal(kcb, (1,), dtype=jnp.float32) * 0.1

    out = jax.block_until_ready(cnn3_forward(x, w_emb, b_emb, w_conv, b_conv))
    ref = jax.block_until_ready(cnn3_reference(x, w_emb, b_emb, w_conv, b_conv))

    assert out.shape == (BATCH, TIMESTEP, EMB_DIM)
    assert jnp.allclose(out, ref, atol=1e-4, rtol=1e-4), "mismatch vs reference"

    print("KERNEL_OK")
</pallas_src>

<mosaic_0001>
module attributes {stable_mosaic.version = 11 : i64} {
  func.func @cnn3_kernel(%arg0: memref<2x128xf32, #tpu.memory_space<vmem>>, %arg1: memref<128x256xf32, #tpu.memory_space<vmem>>, %arg2: memref<1x256xf32, #tpu.memory_space<vmem>>, %arg3: memref<128x256xf32, #tpu.memory_space<vmem>>, %arg4: memref<1x256xf32, #tpu.memory_space<vmem>>, %arg5: memref<2x256xf32, #tpu.memory_space<vmem>>) attributes {dimension_semantics = [], scalar_prefetch = 0 : i64, scratch_operands = 0 : i64, tpu.core_type = #tpu.core_type<tc>} {
    %c0 = arith.constant 0 : index
    %c0_0 = arith.constant 0 : index
    %0 = vector.load %arg0[%c0, %c0_0] : memref<2x128xf32, #tpu.memory_space<vmem>>, vector<2x128xf32>
    %c0_1 = arith.constant 0 : index
    %c0_2 = arith.constant 0 : index
    %1 = vector.load %arg1[%c0_1, %c0_2] : memref<128x256xf32, #tpu.memory_space<vmem>>, vector<128x256xf32>
    %cst = arith.constant dense<0.000000e+00> : vector<2x256xf32>
    %2 = tpu.matmul %0, %1, %cst {dimension_numbers = #tpu.dot_dimension_numbers<[1], [0], [0], [1], [0, 0, 1, 1], [], []>, precision = #tpu.contract_precision<fp32>} : vector<2x128xf32>, vector<128x256xf32>, vector<2x256xf32> -> vector<2x256xf32>
    %c0_3 = arith.constant 0 : index
    %c0_4 = arith.constant 0 : index
    %3 = vector.load %arg2[%c0_3, %c0_4] : memref<1x256xf32, #tpu.memory_space<vmem>>, vector<1x256xf32>
    %4 = vector.broadcast %3 : vector<1x256xf32> to vector<2x256xf32>
    %5 = arith.addf %2, %4 : vector<2x256xf32>
    %c0_5 = arith.constant 0 : index
    %c0_6 = arith.constant 0 : index
    %6 = vector.load %arg3[%c0_5, %c0_6] : memref<128x256xf32, #tpu.memory_space<vmem>>, vector<128x256xf32>
    %cst_7 = arith.constant dense<0.000000e+00> : vector<2x256xf32>
    %7 = tpu.matmul %0, %6, %cst_7 {dimension_numbers = #tpu.dot_dimension_numbers<[1], [0], [0], [1], [0, 0, 1, 1], [], []>, precision = #tpu.contract_precision<fp32>} : vector<2x128xf32>, vector<128x256xf32>, vector<2x256xf32> -> vector<2x256xf32>
    %c0_8 = arith.constant 0 : index
    %c0_9 = arith.constant 0 : index
    %8 = vector.load %arg4[%c0_8, %c0_9] : memref<1x256xf32, #tpu.memory_space<vmem>>, vector<1x256xf32>
    %9 = vector.broadcast %8 : vector<1x256xf32> to vector<2x256xf32>
    %10 = arith.addf %7, %9 : vector<2x256xf32>
    %cst_10 = arith.constant 0.000000e+00 : f32
    %11 = vector.broadcast %cst_10 : f32 to vector<2x256xf32>
    %12 = arith.maximumf %10, %11 : vector<2x256xf32>
    %13 = arith.addf %12, %5 : vector<2x256xf32>
    %c0_11 = arith.constant 0 : index
    %c0_12 = arith.constant 0 : index
    %14 = vector.load %arg5[%c0_11, %c0_12] : memref<2x256xf32, #tpu.memory_space<vmem>>, vector<2x256xf32>
    tpu.vector_store %arg5[%c0_11, %c0_12], %13 {strides = array<i32>} : memref<2x256xf32, #tpu.memory_space<vmem>>, vector<2x256xf32>,
    return
  }
}

</mosaic_0001>

<bundles_post_ra>
// kernel: cnn3_forward.1
= control target key start
LH: loop header
LB: loop body
LE: loop exit
PB: predicated region body
PF: predicated region fallthrough
CT: control target
= control target key end

     0   :  { %v3233_v3 = vmov 0.0   ;;  %s3213_s1 = inlined_call_operand.vmem [shape: f32[128,256], index: 1, kind: input, shape index: {}]   ;;  %s3214_s0 = inlined_call_operand.vmem [shape: f32[2,128], index: 0, kind: input, shape index: {}]   ;;  %s3215_s3 = inlined_call_operand.vmem [shape: f32[128,256], index: 3, kind: input, shape index: {}]   ;;  %s3216_s4 = inlined_call_operand.vmem [shape: f32[1,256], index: 4, kind: input, shape index: {}]   ;;  %s3217_s2 = inlined_call_operand.vmem [shape: f32[1,256], index: 2, kind: input, shape index: {}]   ;;  %s3218_s5 = inlined_call_operand.vmem [shape: f32[2,256], index: 5, kind: output, shape index: {}]  }
   0x1   :  { %v52_v0 = vld [vmem:[%s3213_s1 + $0xf8] sm:$0xff]  ;;  %v51_v1 = vld [vmem:[%s3213_s1 + $0xf0] sm:$0xff]  ;;  %v50_v2 = vld [vmem:[%s3213_s1 + $0xe8] sm:$0xff]  ;;  %161 = vmatprep.mubr.f32.mxu0 %v3233_v3  ;;  %397 = vmatprep.mubr.f32.mxu1 %v3233_v3 }
   0x2   :  { %v1883_v4 = vand.u32 4294901760, %v52_v0  ;;  %v1885_v5 = vand.u32 4294901760, %v51_v1  ;;  %v1887_v6 = vand.u32 4294901760, %v50_v2  ;;  %v49_v7 = vld [vmem:[%s3213_s1 + $0xe0] sm:$0xff]  ;;  %v48_v8 = vld [vmem:[%s3213_s1 + $0xd8] sm:$0xff]  ;;  %v47_v9 = vld [vmem:[%s3213_s1 + $0xd0] sm:$0xff] }
   0x3   :  { %v1898_v10 = vand.u32 4294901760, %v49_v7  ;;  %v1900_v11 = vand.u32 4294901760, %v48_v8  ;;  %v1902_v12 = vand.u32 4294901760, %v47_v9  ;;  %v46_v13 = vld [vmem:[%s3213_s1 + $0xc8] sm:$0xff]  ;;  %v45_v14 = vld [vmem:[%s3213_s1 + $0xc0] sm:$0xff]  ;;  %v44_v15 = vld [vmem:[%s3213_s1 + $0xb8] sm:$0xff] }
   0x4   :  { %66 = vmatprep.subr.mxu0 %v1883_v4  ;;  %v1914_v16 = vand.u32 4294901760, %v46_v13  ;;  %v1916_v17 = vand.u32 4294901760, %v45_v14  ;;  %v1918_v18 = vand.u32 4294901760, %v44_v15  ;;  %v1921_v19 = vsub.f32 %v52_v0, %v1883_v4  ;;  %v1926_v20 = vld [vmem:[%s3213_s1 + $0xb0] sm:$0xff]  ;;  %v1931_v21 = vld [vmem:[%s3213_s1 + $0xa8] sm:$0xff]  ;;  %v1936_v22 = vld [vmem:[%s3213_s1 + $0xa0] sm:$0xff] }
   0x5   :  { %68 = vmatpush1.msra.mxu0 %v1885_v5  ;;  %v1940_v23 = vand.u32 4294901760, %v1926_v20  ;;  %v1943_v24 = vsub.f32 %v51_v1, %v1885_v5  ;;  %v1946_v25 = vand.u32 4294901760, %v1931_v21  ;;  %v1949_v26 = vsub.f32 %v50_v2, %v1887_v6  ;;  %v1954_v27 = vld [vmem:[%s3213_s1 + $0x98] sm:$0xff]  ;;  %v1959_v28 = vld [vmem:[%s3213_s1 + $0x90] sm:$0xff]  ;;  %v1964_v29 = vld [vmem:[%s3213_s1 + $0x88] sm:$0xff] }
   0x6   :  { %70 = vmatprep.subr.mxu0 %v1887_v6  ;;  %v3232_v30 = vand.u32 4294901760, %v1921_v19  ;;  %v1969_v31 = vand.u32 4294901760, %v1936_v22  ;;  %v1972_v32 = vsub.f32 %v49_v7, %v1898_v10  ;;  %v1975_v33 = vand.u32 4294901760, %v1954_v27  ;;  %v1989_v38 = vld [vmem:[%s3213_s1 + $0x80] sm:$0xff]  ;;  %v2016_v47 = vld [vmem:[%s3213_s1 + $0x78] sm:$0xff]  ;;  %v2029_v52 = vld [vmem:[%s3213_s1 + $0x70] sm:$0xff] }
   0x7   :  { %72 = vmatpush1.msra.mxu0 %v1898_v10  ;;  %v3230_v34 = vand.u32 4294901760, %v1943_v24  ;;  %v3229_v35 = vand.u32 4294901760, %v1949_v26  ;;  %v1981_v36 = vsub.f32 %v48_v8, %v1900_v11  ;;  %v1984_v37 = vand.u32 4294901760, %v1959_v28  ;;  %v2039_v57 = vld [vmem:[%s3213_s1 + $0x68] sm:$0xff]  ;;  %v2054_v62 = vld [vmem:[%s3213_s1 + $0x60] sm:$0xff]  ;;  %v2069_v7 = vld [vmem:[%s3213_s1 + $0x58] sm:$0xff] }
   0x8   :  { %3345 = vst [vmem:[#allocation2_spill] sm:$0xff] %v1975_v33  ;;  %74 = vmatprep.subr.mxu0 %v1900_v11  ;;  %v176_v39 = vsub.f32 %v1921_v19, %v3232_v30  ;;  %v3227_v40 = vand.u32 4294901760, %v1972_v32  ;;  %v1997_v41 = vsub.f32 %v47_v9, %v1902_v12  ;;  %v2000_v42 = vand.u32 4294901760, %v1964_v29  ;;  %v2205_v30 = vld [vmem:[%s3213_s1 + $0x18] sm:$0xff] }
   0x9   :  { %3346 = vst [vmem:[#allocation3_spill] sm:$0xff] %v1984_v37  ;;  %76 = vmatpush1.msra.mxu0 %v1902_v12  ;;  %v182_v43 = vsub.f32 %v1943_v24, %v3230_v34  ;;  %v188_v44 = vsub.f32 %v1949_v26, %v3229_v35  ;;  %v3225_v45 = vand.u32 4294901760, %v1981_v36  ;;  %v2011_v46 = vsub.f32 %v46_v13, %v1914_v16 }
   0xa   :  { %3347 = vst [vmem:[#allocation4_spill] sm:$0xff] %v2000_v42  ;;  %78 = vmatprep.subr.mxu0 %v1914_v16  ;;  %v177_v48 = vand.u32 4294901760, %v176_v39  ;;  %v194_v49 = vsub.f32 %v1972_v32, %v3227_v40  ;;  %v3224_v50 = vand.u32 4294901760, %v1997_v41  ;;  %v2024_v51 = vand.u32 4294901760, %v1989_v38  ;;  %v2178_v40 = vld [vmem:[%s3213_s1 + $0x28] sm:$0xff] }
   0xb   :  { %80 = vmatpush1.msra.mxu0 %v1916_v17  ;;  %v183_v53 = vand.u32 4294901760, %v182_v43  ;;  %v189_v54 = vand.u32 4294901760, %v188_v44  ;;  %v200_v55 = vsub.f32 %v1981_v36, %v3225_v45  ;;  %v3222_v56 = vand.u32 4294901760, %v2011_v46  ;;  %v2162_v45 = vld [vmem:[%s3213_s1 + $0x30] sm:$0xff] }
   0xc   :  { %3348 = vst [vmem:[#allocation5_spill] sm:$0xff] %v2024_v51  ;;  %82 = vmatprep.subr.mxu0 %v1918_v18  ;;  %178 = vmatprep.subr.mxu1 %v177_v48  ;;  %v195_v58 = vand.u32 4294901760, %v194_v49  ;;  %v206_v59 = vsub.f32 %v1997_v41, %v3224_v50  ;;  %v2046_v60 = vsub.f32 %v45_v14, %v1916_v17  ;;  %v2049_v61 = vand.u32 4294901760, %v2016_v47 }
   0xd   :  { %84 = vmatpush1.msra.mxu0 %v1940_v23  ;;  %184 = vmatpush1.msra.mxu1 %v183_v53  ;;  %v201_v63 = vand.u32 4294901760, %v200_v55  ;;  %v212_v0 = vsub.f32 %v2011_v46, %v3222_v56  ;;  %v2061_v1 = vsub.f32 %v44_v15, %v1918_v18  ;;  %v2064_v2 = vand.u32 4294901760, %v2029_v52  ;;  %v2083_v15 = vld [vmem:[%s3213_s1 + $0x50] sm:$0xff] }
   0xe   :  { %3349 = vst [vmem:[#allocation6_spill] sm:$0xff] %v2049_v61  ;;  %86 = vmatprep.subr.mxu0 %v1946_v25  ;;  %190 = vmatprep.subr.mxu1 %v189_v54  ;;  %v207_v8 = vand.u32 4294901760, %v206_v59  ;;  %v3220_v9 = vand.u32 4294901760, %v2046_v60  ;;  %v2075_v13 = vsub.f32 %v1926_v20, %v1940_v23  ;;  %v2078_v14 = vand.u32 4294901760, %v2039_v57 }
   0xf   :  { %3350 = vst [vmem:[#allocation7_spill] sm:$0xff] %v2064_v2  ;;  %88 = vmatpush1.msra.mxu0 %v1969_v31  ;;  %196 = vmatpush1.msra.mxu1 %v195_v58  ;;  %v213_v39 = vand.u32 4294901760, %v212_v0  ;;  %v3219_v43 = vand.u32 4294901760, %v2061_v1  ;;  %v2089_v44 = vsub.f32 %v1931_v21, %v1946_v25  ;;  %v2092_v20 = vand.u32 4294901760, %v2054_v62  ;;  %v2109_v21 = vld [vmem:[%s3213_s1 + $0x48] sm:$0xff] }
  0x10   :  { %3351 = vst [vmem:[#allocation8_spill] sm:$0xff] %v2078_v14  ;;  %90 = vmatprep.subr.mxu0 %v1975_v33  ;;  %202 = vmatprep.subr.mxu1 %v201_v63  ;;  %v218_v48 = vsub.f32 %v2046_v60, %v3220_v9  ;;  %v3221_v49 = vand.u32 4294901760, %v2075_v13  ;;  %v2101_v53 = vsub.f32 %v1936_v22, %v1969_v31  ;;  %v2104_v54 = vand.u32 4294901760, %v2069_v7 }
  0x11   :  { %3352 = vst [vmem:[#allocation9_spill] sm:$0xff] %v2092_v20  ;;  %92 = vmatpush1.msra.mxu0 %v1984_v37  ;;  %208 = vmatpush1.msra.mxu1 %v207_v8  ;;  %v224_v55 = vsub.f32 %v2061_v1, %v3219_v43  ;;  %v3223_v58 = vand.u32 4294901760, %v2089_v44  ;;  %v2118_v22 = vsub.f32 %v1954_v27, %v1975_v33  ;;  %v2121_v59 = vand.u32 4294901760, %v2083_v15  ;;  %v2135_v27 = vld [vmem:[%s3213_s1 + $0x40] sm:$0xff] }
  0x12   :  { %3353 = vst [vmem:[#allocation10_spill] sm:$0xff] %v2104_v54  ;;  %94 = vmatprep.subr.mxu0 %v2000_v42  ;;  %214 = vmatprep.subr.mxu1 %v213_v39  ;;  %v219_v63 = vand.u32 4294901760, %v218_v48  ;;  %v230_v0 = vsub.f32 %v2075_v13, %v3221_v49  ;;  %v3226_v8 = vand.u32 4294901760, %v2101_v53  ;;  %v2130_v43 = vsub.f32 %v1959_v28, %v1984_v37  ;;  %v2148_v28 = vld [vmem:[%s3213_s1 + $0x38] sm:$0xff] }
  0x13   :  { %3354 = vst [vmem:[#allocation11_spill] sm:$0xff] %v2121_v59  ;;  %96 = vmatpush1.msra.mxu0 %v2024_v51  ;;  %v225_v9 = vand.u32 4294901760, %v224_v55  ;;  %v236_v39 = vsub.f32 %v2089_v44, %v3223_v58  ;;  %v3228_v48 = vand.u32 4294901760, %v2118_v22  ;;  %v2143_v49 = vand.u32 4294901760, %v2109_v21 }
  0x14   :  { %220 = vmatpush1.msra.mxu1 %v219_v63  ;;  %98 = vmatprep.subr.mxu0 %v2049_v61  ;;  %v231_v56 = vand.u32 4294901760, %v230_v0  ;;  %v242_v55 = vsub.f32 %v2101_v53, %v3226_v8  ;;  %v3231_v58 = vand.u32 4294901760, %v2130_v43  ;;  %v2157_v50 = vsub.f32 %v1964_v29, %v2000_v42 }
  0x15   :  { %3355 = vst [vmem:[#allocation12_spill] sm:$0xff] %v2143_v49  ;;  %226 = vmatprep.subr.mxu1 %v225_v9  ;;  %100 = vmatpush1.msra.mxu0 %v2064_v2  ;;  %v237_v63 = vand.u32 4294901760, %v236_v39  ;;  %v248_v0 = vsub.f32 %v2118_v22, %v3228_v48  ;;  %v2169_v8 = vand.u32 4294901760, %v2135_v27  ;;  %v2173_v29 = vsub.f32 %v1989_v38, %v2024_v51  ;;  %v2191_v38 = vld [vmem:[%s3213_s1 + $0x20] sm:$0xff] }
  0x16   :  { %232 = vmatpush1.msra.mxu1 %v231_v56  ;;  %102 = vmatprep.subr.mxu0 %v2078_v14  ;;  %v243_v9 = vand.u32 4294901760, %v242_v55  ;;  %v254_v39 = vsub.f32 %v2130_v43, %v3231_v58  ;;  %v3237_v48 = vand.u32 4294901760, %v2157_v50  ;;  %v2186_v35 = vand.u32 4294901760, %v2148_v28 }
  0x17   :  { %3356 = vst [vmem:[#allocation13_spill] sm:$0xff] %v2169_v8  ;;  %238 = vmatprep.subr.mxu1 %v237_v63  ;;  %104 = vmatpush1.msra.mxu0 %v2092_v20  ;;  %v249_v56 = vand.u32 4294901760, %v248_v0  ;;  %v3238_v55 = vand.u32 4294901760, %v2173_v29  ;;  %v2197_v34 = vsub.f32 %v2016_v47, %v2049_v61  ;;  %v2200_v58 = vand.u32 4294901760, %v2162_v45 }
  0x18   :  { %3357 = vst [vmem:[#allocation14_spill] sm:$0xff] %v2186_v35  ;;  %244 = vmatpush1.msra.mxu1 %v243_v9  ;;  %106 = vmatprep.subr.mxu0 %v2104_v54  ;;  %v255_v63 = vand.u32 4294901760, %v254_v39  ;;  %v260_v0 = vsub.f32 %v2157_v50, %v3237_v48  ;;  %v2213_v47 = vsub.f32 %v2029_v52, %v2064_v2  ;;  %v2216_v3 = vand.u32 4294901760, %v2178_v40  ;;  %v2233_v52 = vld [vmem:[%s3213_s1 + $0x10] sm:$0xff] }
  0x19   :  { %3358 = vst [vmem:[#allocation15_spill] sm:$0xff] %v2200_v58  ;;  %250 = vmatprep.subr.mxu1 %v249_v56  ;;  %108 = vmatpush1.msra.mxu0 %v2121_v59  ;;  %v266_v9 = vsub.f32 %v2173_v29, %v3238_v55  ;;  %v2225_v61 = vsub.f32 %v2039_v57, %v2078_v14  ;;  %v2228_v48 = vand.u32 4294901760, %v2191_v38  ;;  %v2242_v57 = vand.u32 4294901760, %v2205_v30  ;;  %v2247_v14 = vld [vmem:[%s3213_s1 + $0x8] sm:$0xff] }
  0x1a   :  { %3359 = vst [vmem:[#allocation16_spill] sm:$0xff] %v2216_v3  ;;  %256 = vmatpush1.msra.mxu1 %v255_v63  ;;  %110 = vmatprep.subr.mxu0 %v2143_v49  ;;  %v261_v56 = vand.u32 4294901760, %v260_v0  ;;  %v2239_v39 = vsub.f32 %v2054_v62, %v2092_v20  ;;  %v3362_v2 = vand.u32 4294901760, %v2197_v34  ;;  %v2256_v62 = vsub.f32 %v2069_v7, %v2104_v54  ;;  %v2273_v7 = vld [vmem:[%s3213_s1] sm:$0xff] }
  0x1b   :  { %3360 = vst [vmem:[#allocation17_spill] sm:$0xff] %v2228_v48  ;;  %3361 = vst [vmem:[#allocation18_spill] sm:$0xff] %v2242_v57  ;;  %112 = vmatpush1.msra.mxu0 %v2169_v8  ;;  %v267_v63 = vand.u32 4294901760, %v266_v9  ;;  %v3255_v55 = vand.u32 4294901760, %v2225_v61  ;;  %v3364_v20 = vand.u32 4294901760, %v2213_v47  ;;  %v2264_v9 = vand.u32 4294901760, %v2233_v52 }
  0x1c   :  { %v272_v0 = vsub.f32 %v2197_v34, %v3362_v2  ;;  %3363 = vst [vmem:[#allocation19_spill] sm:$0xff] %v2256_v62  ;;  %262 = vmatprep.subr.mxu1 %v261_v56  ;;  %114 = vmatprep.subr.mxu0 %v2186_v35  ;;  %v2268_v2 = vsub.f32 %v2083_v15, %v2121_v59  ;;  %v2281_v54 = vand.u32 4294901760, %v2247_v14  ;;  %v3365_v59 = vand.u32 4294901760, %v2239_v39 }
  0x1d   :  { %v278_v51 = vsub.f32 %v2213_v47, %v3364_v20  ;;  %268 = vmatpush1.msra.mxu1 %v267_v63  ;;  %116 = vmatpush1.msra.mxu0 %v2200_v58  ;;  %v284_v20 = vsub.f32 %v2225_v61, %v3255_v55  ;;  %v20_v55 = vld [vmem:[%s3214_s0] sm:$0x3]  ;;  %v2304_v63 = vsub.f32 %v2135_v27, %v2169_v8 }
  0x1e   :  { %v273_v56 = vand.u32 4294901760, %v272_v0  ;;  %118 = vmatprep.subr.mxu0 %v2216_v3  ;;  %v290_v37 = vsub.f32 %v2239_v39, %v3365_v59  ;;  %v2290_v0 = vsub.f32 %v2109_v21, %v2143_v49  ;;  %v2300_v59 = vand.u32 4294901760, %v2273_v7 }
  0x1f   :  { %v279_v15 = vand.u32 4294901760, %v278_v51  ;;  %v285_v42 = vand.u32 4294901760, %v284_v20  ;;  %120 = vmatpush1.msra.mxu0 %v2228_v48  ;;  %v3366_v51 = vand.u32 4294901760, %v2256_v62  ;;  %v3265_v27 = vand.u32 4294901760, %v2304_v63 }
  0x20   :  { %274 = vmatprep.subr.mxu1 %v273_v56  ;;  %v291_v21 = vand.u32 4294901760, %v290_v37  ;;  %122 = vmatprep.subr.mxu0 %v2242_v57  ;;  %v3367_v56 = vand.u32 4294901760, %v2268_v2  ;;  %v3262_v49 = vand.u32 4294901760, %v2290_v0  ;;  %v2321_v37 = vsub.f32 %v2162_v45, %v2200_v58 }
  0x21   :  { %v296_v33 = vsub.f32 %v2256_v62, %v3366_v51  ;;  %280 = vmatpush1.msra.mxu1 %v279_v15  ;;  %v2313_v51 = vsub.f32 %v2148_v28, %v2186_v35  ;;  %124 = vmatpush1.msra.mxu0 %v2264_v9  ;;  %v2317_v15 = vand.u32 4294901760, %v20_v55  ;;  %v314_v45 = vsub.f32 %v2304_v63, %v3265_v27 }
  0x22   :  { %v302_v20 = vsub.f32 %v2268_v2, %v3367_v56  ;;  %286 = vmatprep.subr.mxu1 %v285_v42  ;;  %126 = vmatprep.subr.mxu0 %v2281_v54  ;;  %v308_v28 = vsub.f32 %v2290_v0, %v3262_v49  ;;  %v2330_v42 = vsub.f32 %v2178_v40, %v2216_v3 }
  0x23   :  { %v297_v62 = vand.u32 4294901760, %v296_v33  ;;  %3368 = vst [vmem:[#allocation20_spill] sm:$0xff] %v2317_v15  ;;  %292 = vmatpush1.msra.mxu1 %v291_v21  ;;  %128 = vmatpush1.msra.mxu0 %v2300_v59  ;;  %v2337_v21 = vsub.f32 %v20_v55, %v2317_v15  ;;  %v2342_v49 = vsub.f32 %v2191_v38, %v2228_v48  ;;  %v3370_v40 = vand.u32 4294901760, %v2313_v51 }
  0x24   :  { %v303_v56 = vand.u32 4294901760, %v302_v20  ;;  %v309_v33 = vand.u32 4294901760, %v308_v28  ;;  %407 = vmatprep.subr.mxu0 %v1921_v19  ;;  %v3272_v3 = vand.u32 4294901760, %v2330_v42  ;;  %v2351_v55 = vsub.f32 %v2205_v30, %v2242_v57 }
  0x25   :  { %298 = vmatprep.subr.mxu1 %v297_v62  ;;  %3369 = vst [vmem:[#allocation21_spill] sm:$0xff] %v2337_v21  ;;  %v320_v62 = vsub.f32 %v2313_v51, %v3370_v40  ;;  %v315_v27 = vand.u32 4294901760, %v314_v45  ;;  %v2354_v20 = vand.u32 4294901760, %v2337_v21  ;;  %v3372_v38 = vand.u32 4294901760, %v2321_v37 }
  0x26   :  { %304 = vmatpush1.msra.mxu1 %v303_v56  ;;  %v3273_v28 = vand.u32 4294901760, %v2342_v49  ;;  %v332_v48 = vsub.f32 %v2330_v42, %v3272_v3  ;;  %v3279_v58 = vand.u32 4294901760, %v2351_v55  ;;  %v2366_v30 = vsub.f32 %v2233_v52, %v2264_v9 }
  0x27   :  { %3371 = vst [vmem:[#allocation22_spill] sm:$0xff] %v2354_v20  ;;  %v326_v56 = vsub.f32 %v2321_v37, %v3372_v38  ;;  %310 = vmatprep.subr.mxu1 %v309_v33  ;;  %v321_v40 = vand.u32 4294901760, %v320_v62  ;;  %v165_v45 = vsub.f32 %v2337_v21, %v2354_v20  ;;  %v2375_v62 = vsub.f32 %v2247_v14, %v2281_v54 }
  0x28   :  { %3373 = vst [vmem:[#allocation23_spill] sm:$0xff] %v2366_v30  ;;  %316 = vmatpush1.msra.mxu1 %v315_v27  ;;  %v338_v33 = vsub.f32 %v2342_v49, %v3273_v28  ;;  %v333_v38 = vand.u32 4294901760, %v332_v48  ;;  %v344_v52 = vsub.f32 %v2351_v55, %v3279_v58  ;;  %v3278_v27 = vand.u32 4294901760, %v2366_v30  ;;  %v3388_v58 = vld [vmem:[#allocation12_spill] sm:$0xff] }
  0x29   :  { %v327_v57 = vand.u32 4294901760, %v326_v56  ;;  %322 = vmatprep.subr.mxu1 %v321_v40  ;;  %v2383_v3 = vsub.f32 %v2273_v7, %v2300_v59  ;;  %v2385_v56 = vand.u32 4294901760, %v165_v45  ;;  %v3277_v20 = vand.u32 4294901760, %v2375_v62 }
  0x2a   :  { %v339_v28 = vand.u32 4294901760, %v338_v33  ;;  %v345_v14 = vand.u32 4294901760, %v344_v52  ;;  %v350_v48 = vsub.f32 %v2366_v30, %v3278_v27  ;;  %v3377_v52 = vld [vmem:[#allocation2_spill] sm:$0xff]  ;;  %v3387_v27 = vld [vmem:[#allocation11_spill] sm:$0xff] }
  0x2b   :  { %3374 = vst [vmem:[#allocation24_spill] sm:$0xff] %v2383_v3  ;;  %3375 = vst [vmem:[#allocation25_spill] sm:$0xff] %v2385_v56  ;;  %328 = vmatpush1.msra.mxu1 %v327_v57  ;;  %v3276_v40 = vand.u32 4294901760, %v2383_v3  ;;  %167 = vmatmul.mubr.f32.vlgmr.msra.gmra.mxu0 %v2385_v56  ;;  %v356_v7 = vsub.f32 %v2375_v62, %v3277_v20  ;;  %v3386_v20 = vld [vmem:[#allocation10_spill] sm:$0xff]  ;;  %v3389_v56 = vand.u32 4294901760, %v1921_v19  ;;  %v3397_v19 = vand.u32 4294901760, %v1981_v36 }
  0x2c   :  { %334 = vmatprep.subr.mxu1 %v333_v38  ;;  %410 = vmatpush1.msra.mxu0 %v1943_v24  ;;  %v351_v57 = vand.u32 4294901760, %v350_v48  ;;  %v3376_v38 = vmov 0.0   ;;  %v3379_v48 = vld [vmem:[#allocation3_spill] sm:$0xff] }
  0x2d   :  { %340 = vmatpush1.msra.mxu1 %v339_v28  ;;  %v362_v45 = vsub.f32 %v2383_v3, %v3276_v40  ;;  %413 = vmatprep.subr.mxu0 %v1949_v26  ;;  %v357_v33 = vand.u32 4294901760, %v356_v7  ;;  %v3380_v7 = vld [vmem:[#allocation4_spill] sm:$0xff]  ;;  %v3385_v40 = vld [vmem:[#allocation9_spill] sm:$0xff] }
  0x2e   :  { %346 = vmatprep.subr.mxu1 %v345_v14  ;;  %533 = vmatprep.mubr.f32.mxu0 %v3376_v38  ;;  %v3378_v14 = vld [vmem:[#allocation19_spill] sm:$0xff] }
  0x2f   :  { %416 = vmatpush1.msra.mxu0 %v1972_v32  ;;  %352 = vmatpush1.msra.mxu1 %v351_v57  ;;  %v363_v28 = vand.u32 4294901760, %v362_v45  ;;  %v3381_v57 = vld [vmem:[#allocation5_spill] sm:$0xff]  ;;  %v3382_v45 = vld [vmem:[#allocation6_spill] sm:$0xff] }
  0x30   :  { %419 = vmatprep.subr.mxu0 %v1981_v36  ;;  %358 = vmatprep.subr.mxu1 %v357_v33  ;;  %v3383_v33 = vld [vmem:[#allocation7_spill] sm:$0xff]  ;;  %v3402_v36 = vand.u32 4294901760, %v2061_v1 }
  0x31   :  { %422 = vmatpush1.msra.mxu0 %v1997_v41  ;;  %364 = vmatpush1.msra.mxu1 %v363_v28  ;;  %v3384_v28 = vld [vmem:[#allocation8_spill] sm:$0xff] }
  0x32   :  { %425 = vmatprep.subr.mxu0 %v2011_v46  ;;  %399 = vmatmul.mubr.f32.vlgmr.msra.gmra.mxu1 %v2317_v15  ;;  %v3390_v15 = vld [vmem:[#allocation15_spill] sm:$0xff] }
  0x33   :  { %428 = vmatpush1.msra.mxu0 %v2046_v60  ;;  %543 = vmatprep.subr.mxu1 %v1883_v4 }
  0x34   :  { %431 = vmatprep.subr.mxu0 %v2061_v1  ;;  %545 = vmatpush1.msra.mxu1 %v1885_v5  ;;  %v3406_v1 = vand.u32 4294901760, %v2118_v22 }
  0x35   :  { %434 = vmatpush1.msra.mxu0 %v2075_v13  ;;  %547 = vmatprep.subr.mxu1 %v1887_v6 }
  0x36   :  { %437 = vmatprep.subr.mxu0 %v2089_v44  ;;  %549 = vmatpush1.msra.mxu1 %v1898_v10 }
  0x37   :  { %440 = vmatpush1.msra.mxu0 %v2101_v53  ;;  %551 = vmatprep.subr.mxu1 %v1900_v11 }
  0x38   :  { %443 = vmatprep.subr.mxu0 %v2118_v22  ;;  %553 = vmatpush1.msra.mxu1 %v1902_v12  ;;  %v944_v22 = vld [vmem:[%s3215_s3 + $0xc0] sm:$0xff] }
  0x39   :  { %446 = vmatpush1.msra.mxu0 %v2130_v43  ;;  %555 = vmatprep.subr.mxu1 %v1914_v16 }
  0x3a   :  { %449 = vmatprep.subr.mxu0 %v2157_v50  ;;  %557 = vmatpush1.msra.mxu1 %v1916_v17 }
  0x3b   :  { %452 = vmatpush1.msra.mxu0 %v2173_v29  ;;  %559 = vmatprep.subr.mxu1 %v1918_v18 }
  0x3c   :  { %455 = vmatprep.subr.mxu0 %v2197_v34  ;;  %561 = vmatpush1.msra.mxu1 %v1940_v23 }
  0x3d   :  { %458 = vmatpush1.msra.mxu0 %v2213_v47  ;;  %563 = vmatprep.subr.mxu1 %v1946_v25 }
  0x3e   :  { %461 = vmatprep.subr.mxu0 %v2225_v61  ;;  %565 = vmatpush1.msra.mxu1 %v1969_v31 }
  0x3f   :  { %464 = vmatpush1.msra.mxu0 %v2239_v39  ;;  %567 = vmatprep.subr.mxu1 %v3377_v52 }
  0x40   :  { %467 = vmatprep.subr.mxu0 %v3378_v14  ;;  %569 = vmatpush1.msra.mxu1 %v3379_v48 }
  0x41   :  { %470 = vmatpush1.msra.mxu0 %v2268_v2  ;;  %571 = vmatprep.subr.mxu1 %v3380_v7 }
  0x42   :  { %473 = vmatprep.subr.mxu0 %v2290_v0  ;;  %573 = vmatpush1.msra.mxu1 %v3381_v57 }
  0x43   :  { %476 = vmatpush1.msra.mxu0 %v2304_v63  ;;  %575 = vmatprep.subr.mxu1 %v3382_v45 }
  0x44   :  { %479 = vmatprep.subr.mxu0 %v2313_v51  ;;  %577 = vmatpush1.msra.mxu1 %v3383_v33 }
  0x45   :  { %482 = vmatpush1.msra.mxu0 %v2321_v37  ;;  %579 = vmatprep.subr.mxu1 %v3384_v28 }
  0x46   :  { %485 = vmatprep.subr.mxu0 %v2330_v42  ;;  %581 = vmatpush1.msra.mxu1 %v3385_v40 }
  0x47   :  { %488 = vmatpush1.msra.mxu0 %v2342_v49  ;;  %583 = vmatprep.subr.mxu1 %v3386_v20 }
  0x48   :  { %491 = vmatprep.subr.mxu0 %v2351_v55  ;;  %585 = vmatpush1.msra.mxu1 %v3387_v27  ;;  %v3391_v27 = vand.u32 4294901760, %v1943_v24  ;;  %v3398_v24 = vand.u32 4294901760, %v1997_v41  ;;  %v3403_v41 = vand.u32 4294901760, %v2075_v13 }
  0x49   :  { %494 = vmatpush1.msra.mxu0 %v2366_v30  ;;  %587 = vmatprep.subr.mxu1 %v3388_v58  ;;  %v3392_v30 = vld [vmem:[#allocation16_spill] sm:$0xff]  ;;  %v3393_v58 = vand.u32 4294901760, %v1949_v26  ;;  %v3399_v26 = vand.u32 4294901760, %v2011_v46  ;;  %v3404_v46 = vand.u32 4294901760, %v2089_v44 }
  0x4a   :  { %497 = vmatprep.subr.mxu0 %v2375_v62  ;;  %589 = vmatpush1.msra.mxu1 %v2169_v8  ;;  %v3394_v8 = vld [vmem:[#allocation17_spill] sm:$0xff] }
  0x4b   :  { %500 = vmatpush1.msra.mxu0 %v2383_v3  ;;  %591 = vmatprep.subr.mxu1 %v2186_v35  ;;  %v3395_v3 = vand.u32 4294901760, %v1972_v32  ;;  %v3396_v35 = vld [vmem:[#allocation18_spill] sm:$0xff] }
  0x4c   :  { %536 = vmatmul.mubr.f32.vlgmr.msra.gmra.mxu0 %v2337_v21  ;;  %651 = vmatprep.subr.mxu0 %v3389_v56  ;;  %v3401_v32 = vld [vmem:[#allocation22_spill] sm:$0xff] }
  0x4d   :  { %593 = vmatpush1.msra.mxu1 %v3390_v15  ;;  %655 = vmatpush1.msra.mxu0 %v3391_v27  ;;  %v3417_v27 = vand.u32 4294901760, %v2304_v63  ;;  %v942_v63 = vld [vmem:[%s3215_s3 + $0xb0] sm:$0xff] }
  0x4e   :  { %595 = vmatprep.subr.mxu1 %v3392_v30  ;;  %659 = vmatprep.subr.mxu0 %v3393_v58 }
  0x4f   :  { %597 = vmatpush1.msra.mxu1 %v3394_v8  ;;  %663 = vmatpush1.msra.mxu0 %v3395_v3  ;;  %v3400_v3 = vand.u32 4294901760, %v2046_v60  ;;  %v3405_v60 = vand.u32 4294901760, %v2101_v53  ;;  %v3415_v53 = vand.u32 4294901760, %v2268_v2 }
  0x50   :  { %599 = vmatprep.subr.mxu1 %v3396_v35  ;;  %667 = vmatprep.subr.mxu0 %v3397_v19  ;;  %v940_v19 = vld [vmem:[%s3215_s3 + $0xa0] sm:$0xff] }
  0x51   :  { %601 = vmatpush1.msra.mxu1 %v2264_v9  ;;  %671 = vmatpush1.msra.mxu0 %v3398_v24  ;;  %v941_v24 = vld [vmem:[%s3215_s3 + $0xa8] sm:$0xff] }
  0x52   :  { %603 = vmatprep.subr.mxu1 %v2281_v54  ;;  %675 = vmatprep.subr.mxu0 %v3399_v26 }
  0x53   :  { %605 = vmatpush1.msra.mxu1 %v2300_v59  ;;  %638 = vmatprep.mubr.f32.mxu1 %v3376_v38 }
  0x54   :  { %679 = vmatpush1.msra.mxu0 %v3400_v3  ;;  %642 = vmatmul.mubr.f32.vlgmr.msra.gmra.mxu1 %v3401_v32 }
  0x55   :  { %683 = vmatprep.subr.mxu0 %v3402_v36  ;;  %817 = vmatprep.subr.mxu1 %v1883_v4  ;;  %v3407_v4 = vand.u32 4294901760, %v2130_v43  ;;  %v3423_v36 = vand.u32 4294901760, %v2342_v49  ;;  %v938_v49 = vld [vmem:[%s3215_s3 + $0x90] sm:$0xff] }
  0x56   :  { %687 = vmatpush1.msra.mxu0 %v3403_v41  ;;  %819 = vmatpush1.msra.mxu1 %v1885_v5  ;;  %v3408_v5 = vand.u32 4294901760, %v2157_v50  ;;  %v3410_v50 = vand.u32 4294901760, %v2197_v34  ;;  %v949_v34 = vld [vmem:[%s3215_s3 + $0xe8] sm:$0xff]  ;;  %v3425_v41 = vand.u32 4294901760, %v2351_v55 }
  0x57   :  { %691 = vmatprep.subr.mxu0 %v3404_v46  ;;  %821 = vmatprep.subr.mxu1 %v1887_v6  ;;  %v951_v6 = vld [vmem:[%s3215_s3 + $0xf8] sm:$0xff]  ;;  %v2552_v58 = vand.u32 4294901760, %v949_v34 }
  0x58   :  { %695 = vmatpush1.msra.mxu0 %v3405_v60  ;;  %823 = vmatpush1.msra.mxu1 %v1898_v10  ;;  %v950_v10 = vld [vmem:[%s3215_s3 + $0xf0] sm:$0xff]  ;;  %v2522_v13 = vand.u32 4294901760, %v951_v6 }
  0x59   :  { %699 = vmatprep.subr.mxu0 %v3406_v1  ;;  %825 = vmatprep.subr.mxu1 %v1900_v11  ;;  %v3409_v11 = vand.u32 4294901760, %v2173_v29  ;;  %v2524_v43 = vand.u32 4294901760, %v950_v10  ;;  %v2626_v1 = vand.u32 4294901760, %v940_v19 }
  0x5a   :  { %703 = vmatpush1.msra.mxu0 %v3407_v4  ;;  %827 = vmatpush1.msra.mxu1 %v1902_v12  ;;  %v948_v12 = vld [vmem:[%s3215_s3 + $0xe0] sm:$0xff]  ;;  %v2558_v29 = vsub.f32 %v951_v6, %v2522_v13  ;;  %v2644_v6 = vand.u32 4294901760, %v941_v24 }
  0x5b   :  { %707 = vmatprep.subr.mxu0 %v3408_v5  ;;  %829 = vmatprep.subr.mxu1 %v1914_v16  ;;  %v3411_v16 = vand.u32 4294901760, %v2213_v47  ;;  %v2532_v44 = vand.u32 4294901760, %v948_v12  ;;  %v3416_v47 = vand.u32 4294901760, %v2290_v0  ;;  %v3418_v0 = vand.u32 4294901760, %v2313_v51  ;;  %3427 = vst [vmem:[#allocation5_spill] sm:$0xff] %v2626_v1  ;;  %v3430_v5 = vld [vmem:[#allocation11_spill] sm:$0xff] }
  0x5c   :  { %711 = vmatpush1.msra.mxu0 %v3409_v11  ;;  %831 = vmatpush1.msra.mxu1 %v1916_v17  ;;  %v3412_v17 = vand.u32 4294901760, %v2225_v61  ;;  %v3414_v61 = vand.u32 4294901760, %v3378_v14  ;;  %v2579_v14 = vand.u32 4294901760, %v944_v22  ;;  %v3293_v51 = vand.u32 4294901760, %v2558_v29  ;;  %3431 = vst [vmem:[#allocation6_spill] sm:$0xff] %v2644_v6  ;;  %v939_v11 = vld [vmem:[%s3215_s3 + $0x98] sm:$0xff] }
  0x5d   :  { %715 = vmatprep.subr.mxu0 %v3410_v50  ;;  %833 = vmatprep.subr.mxu1 %v1918_v18  ;;  %v3413_v18 = vand.u32 4294901760, %v2239_v39  ;;  %v2564_v39 = vsub.f32 %v948_v12, %v2532_v44  ;;  %v3432_v12 = vand.u32 4294901760, %v2375_v62  ;;  %v3433_v50 = vld [vmem:[#allocation12_spill] sm:$0xff] }
  0x5e   :  { %719 = vmatpush1.msra.mxu0 %v3411_v16  ;;  %835 = vmatpush1.msra.mxu1 %v1940_v23  ;;  %v947_v23 = vld [vmem:[%s3215_s3 + $0xd8] sm:$0xff]  ;;  %3419 = vst [vmem:[#allocation2_spill] sm:$0xff] %v2579_v14  ;;  %v2622_v46 = vsub.f32 %v944_v22, %v2579_v14 }
  0x5f   :  { %723 = vmatprep.subr.mxu0 %v3412_v17  ;;  %837 = vmatprep.subr.mxu1 %v1946_v25  ;;  %v946_v25 = vld [vmem:[%s3215_s3 + $0xd0] sm:$0xff]  ;;  %v2566_v2 = vand.u32 4294901760, %v947_v23  ;;  %v3290_v26 = vand.u32 4294901760, %v2564_v39  ;;  %v3437_v22 = vld [vmem:[#allocation13_spill] sm:$0xff] }
  0x60   :  { %727 = vmatpush1.msra.mxu0 %v3413_v18  ;;  %839 = vmatpush1.msra.mxu1 %v1969_v31  ;;  %v2550_v31 = vsub.f32 %v950_v10, %v2524_v43  ;;  %v2571_v56 = vand.u32 4294901760, %v946_v25  ;;  %v3434_v18 = vld [vmem:[#allocation24_spill] sm:$0xff] }
  0x61   :  { %731 = vmatprep.subr.mxu0 %v3414_v61  ;;  %841 = vmatprep.subr.mxu1 %v3377_v52  ;;  %v945_v52 = vld [vmem:[%s3215_s3 + $0xc8] sm:$0xff]  ;;  %v2608_v3 = vsub.f32 %v947_v23, %v2566_v2  ;;  %v2656_v16 = vsub.f32 %v2564_v39, %v3290_v26  ;;  %v3435_v23 = vand.u32 4294901760, %v3434_v18  ;;  %v2668_v61 = vand.u32 4294901760, %v938_v49 }
  0x62   :  { %735 = vmatpush1.msra.mxu0 %v3415_v53  ;;  %843 = vmatpush1.msra.mxu1 %v3379_v48  ;;  %v3420_v48 = vand.u32 4294901760, %v2321_v37  ;;  %v3421_v37 = vand.u32 4294901760, %v2330_v42  ;;  %v2614_v42 = vsub.f32 %v946_v25, %v2571_v56  ;;  %v937_v53 = vld [vmem:[%s3215_s3 + $0x88] sm:$0xff] }
  0x63   :  { %739 = vmatprep.subr.mxu0 %v3416_v47  ;;  %845 = vmatprep.subr.mxu1 %v3380_v7  ;;  %v943_v7 = vld [vmem:[%s3215_s3 + $0xb8] sm:$0xff]  ;;  %v3288_v17 = vand.u32 4294901760, %v2608_v3  ;;  %3436 = vst [vmem:[#allocation7_spill] sm:$0xff] %v2668_v61  ;;  %v3438_v47 = vld [vmem:[#allocation20_spill] sm:$0xff] }
  0x64   :  { %743 = vmatpush1.msra.mxu0 %v3417_v27  ;;  %847 = vmatpush1.msra.mxu1 %v3381_v57  ;;  %v3292_v57 = vand.u32 4294901760, %v2550_v31  ;;  %v2624_v60 = vand.u32 4294901760, %v943_v7  ;;  %v3287_v25 = vand.u32 4294901760, %v2614_v42  ;;  %v2677_v27 = vsub.f32 %v940_v19, %v2626_v1  ;;  %v929_v19 = vld [vmem:[%s3215_s3 + $0x48] sm:$0xff] }
  0x65   :  { %747 = vmatprep.subr.mxu0 %v3418_v0  ;;  %849 = vmatprep.subr.mxu1 %v3382_v45  ;;  %v2593_v45 = vsub.f32 %v949_v34, %v2552_v58  ;;  %v936_v0 = vld [vmem:[%s3215_s3 + $0x80] sm:$0xff] }
  0x66   :  { %751 = vmatpush1.msra.mxu0 %v3420_v48  ;;  %851 = vmatpush1.msra.mxu1 %v3383_v33  ;;  %v2601_v33 = vand.u32 4294901760, %v945_v52  ;;  %3426 = vst [vmem:[#allocation4_spill] sm:$0xff] %v2624_v60  ;;  %v2642_v55 = vsub.f32 %v2550_v31, %v3292_v57  ;;  %v2686_v48 = vsub.f32 %v943_v7, %v2624_v60  ;;  %v2727_v18 = vand.u32 4294901760, %v936_v0 }
  0x67   :  { %755 = vmatprep.subr.mxu0 %v3421_v37  ;;  %853 = vmatprep.subr.mxu1 %v3384_v28  ;;  %v2616_v28 = vand.u32 4294901760, %v942_v63  ;;  %v3291_v10 = vand.u32 4294901760, %v2593_v45  ;;  %v3440_v37 = vld [vmem:[#allocation14_spill] sm:$0xff]  ;;  %v2701_v7 = vsub.f32 %v941_v24, %v2644_v6 }
  0x68   :  { %3422 = vst [vmem:[#allocation19_spill] sm:$0xff] %v2601_v33  ;;  %759 = vmatpush1.msra.mxu0 %v3423_v36  ;;  %855 = vmatpush1.msra.mxu1 %v3385_v40  ;;  %v3428_v40 = vld [vmem:[#allocation23_spill] sm:$0xff]  ;;  %v2660_v34 = vsub.f32 %v945_v52, %v2601_v33  ;;  %v2679_v52 = vand.u32 4294901760, %v939_v11  ;;  %v932_v24 = vld [vmem:[%s3215_s3 + $0x60] sm:$0xff]  ;;  %3442 = vst [vmem:[#allocation10_spill] sm:$0xff] %v2727_v18 }
  0x69   :  { %3424 = vst [vmem:[#allocation3_spill] sm:$0xff] %v2616_v28  ;;  %763 = vmatprep.subr.mxu0 %v3425_v41  ;;  %857 = vmatprep.subr.mxu1 %v3386_v20  ;;  %v3429_v4 = vand.u32 4294901760, %v3428_v40  ;;  %v2637_v20 = vsub.f32 %v2558_v29, %v3293_v51  ;;  %v2666_v62 = vsub.f32 %v942_v63, %v2616_v28  ;;  %v3289_v63 = vand.u32 4294901760, %v2622_v46  ;;  %v934_v40 = vld [vmem:[%s3215_s3 + $0x70] sm:$0xff] }
  0x6a   :  { %859 = vmatpush1.msra.mxu1 %v3430_v5  ;;  %808 = vmatprep.mubr.f32.mxu0 %v3376_v38  ;;  %3439 = vst [vmem:[#allocation8_spill] sm:$0xff] %v2679_v52  ;;  %v2695_v41 = vsub.f32 %v2593_v45, %v3291_v10  ;;  %v2709_v5 = vsub.f32 %v2608_v3, %v3288_v17  ;;  %v2753_v26 = vand.u32 4294901760, %v932_v24  ;;  %v3299_v10 = vand.u32 4294901760, %v2677_v27 }
  0x6b   :  { %767 = vmatpush1.msra.mxu0 %v3429_v4  ;;  %861 = vmatprep.subr.mxu1 %v3433_v50  ;;  %v1076_v36 = vand.u32 4294901760, %v2637_v20  ;;  %v2711_v20 = vand.u32 4294901760, %v937_v53  ;;  %v2725_v50 = vsub.f32 %v2614_v42, %v3287_v25  ;;  %v933_v25 = vld [vmem:[%s3215_s3 + $0x68] sm:$0xff]  ;;  %v2747_v17 = vsub.f32 %v939_v11, %v2679_v52  ;;  %v930_v4 = vld [vmem:[%s3215_s3 + $0x50] sm:$0xff] }
  0x6c   :  { %771 = vmatprep.subr.mxu0 %v3432_v12  ;;  %863 = vmatpush1.msra.mxu1 %v3437_v22  ;;  %v3294_v12 = vand.u32 4294901760, %v2660_v34  ;;  %v3295_v22 = vand.u32 4294901760, %v2666_v62  ;;  %3444 = vst [vmem:[#allocation16_spill] sm:$0xff] %v2753_v26  ;;  %v1100_v57 = vand.u32 4294901760, %v2709_v5  ;;  %v2773_v51 = vsub.f32 %v936_v0, %v2727_v18 }
  0x6d   :  { %775 = vmatpush1.msra.mxu0 %v3435_v23  ;;  %865 = vmatprep.subr.mxu1 %v3440_v37  ;;  %3441 = vst [vmem:[#allocation9_spill] sm:$0xff] %v2711_v20  ;;  %v935_v23 = vld [vmem:[%s3215_s3 + $0x78] sm:$0xff]  ;;  %v2741_v37 = vand.u32 4294901760, %v934_v40 }
  0x6e   :  { %810 = vmatmul.mubr.f32.vlgmr.msra.gmra.mxu0 %v3438_v47  ;;  %965 = vmatprep.subr.mxu0 %v2522_v13  ;;  %v2764_v11 = vand.u32 4294901760, %v935_v23  ;;  %v2778_v5 = vsub.f32 %v2666_v62, %v3295_v22  ;;  %v3450_v22 = vand.u32 4294901760, %v2642_v55  ;;  %v3453_v55 = vand.u32 4294901760, %v2747_v17 }
  0x6f   :  { %867 = vmatpush1.msra.mxu1 %v3390_v15  ;;  %967 = vmatpush1.msra.mxu0 %v2524_v43  ;;  %v2720_v15 = vsub.f32 %v938_v49, %v2668_v61  ;;  %v3296_v49 = vand.u32 4294901760, %v2686_v48  ;;  %3443 = vst [vmem:[#allocation15_spill] sm:$0xff] %v2741_v37 }
  0x70   :  { %869 = vmatprep.subr.mxu1 %v3392_v30  ;;  %969 = vmatprep.subr.mxu0 %v2552_v58  ;;  %v2738_v30 = vsub.f32 %v2622_v46, %v3289_v63  ;;  %v3297_v63 = vand.u32 4294901760, %v2701_v7  ;;  %3445 = vst [vmem:[#allocation17_spill] sm:$0xff] %v2764_v11  ;;  %v2828_v21 = vsub.f32 %v935_v23, %v2764_v11  ;;  %v927_v23 = vld [vmem:[%s3215_s3 + $0x38] sm:$0xff] }
  0x71   :  { %871 = vmatpush1.msra.mxu1 %v3394_v8  ;;  %971 = vmatpush1.msra.mxu0 %v2532_v44  ;;  %v1088_v8 = vand.u32 4294901760, %v2695_v41  ;;  %v2767_v41 = vsub.f32 %v937_v53, %v2711_v20  ;;  %v931_v53 = vld [vmem:[%s3215_s3 + $0x58] sm:$0xff]  ;;  %v2791_v0 = vsub.f32 %v2686_v48, %v3296_v49  ;;  %v2816_v49 = vsub.f32 %v2677_v27, %v3299_v10  ;;  %v926_v10 = vld [vmem:[%s3215_s3 + $0x30] sm:$0xff] }
  0x72   :  { %873 = vmatprep.subr.mxu1 %v3396_v35  ;;  %973 = vmatprep.subr.mxu0 %v2566_v2  ;;  %v2762_v35 = vsub.f32 %v2660_v34, %v3294_v12  ;;  %v2780_v12 = vand.u32 4294901760, %v933_v25  ;;  %v2824_v32 = vand.u32 4294901760, %v931_v53 }
  0x73   :  { %875 = vmatpush1.msra.mxu1 %v2264_v9  ;;  %975 = vmatpush1.msra.mxu0 %v2571_v56  ;;  %3446 = vst [vmem:[#allocation18_spill] sm:$0xff] %v2767_v41  ;;  %v1106_v9 = vand.u32 4294901760, %v2725_v50  ;;  %v2794_v50 = vsub.f32 %v934_v40, %v2741_v37  ;;  %v2811_v40 = vsub.f32 %v932_v24, %v2753_v26  ;;  %v3455_v24 = vand.u32 4294901760, %v2656_v16 }
  0x74   :  { %877 = vmatprep.subr.mxu1 %v2281_v54  ;;  %977 = vmatprep.subr.mxu0 %v2601_v33  ;;  %3447 = vst [vmem:[#allocation23_spill] sm:$0xff] %v2780_v12  ;;  %v1118_v54 = vand.u32 4294901760, %v2738_v30  ;;  %v2808_v30 = vsub.f32 %v2701_v7, %v3297_v63  ;;  %v1112_v63 = vand.u32 4294901760, %v2762_v35  ;;  %3449 = vst [vmem:[#allocation12_spill] sm:$0xff] %v2824_v32  ;;  %v3457_v16 = vand.u32 4294901760, %v2767_v41 }
  0x75   :  { %879 = vmatpush1.msra.mxu1 %v2300_v59  ;;  %912 = vmatprep.mubr.f32.mxu1 %v3376_v38  ;;  %3448 = vst [vmem:[#allocation11_spill] sm:$0xff] %v2794_v50  ;;  %v928_v59 = vld [vmem:[%s3215_s3 + $0x40] sm:$0xff] }
  0x76   :  { %979 = vmatpush1.msra.mxu0 %v2579_v14  ;;  %914 = vmatmul.mubr.f32.vlgmr.msra.gmra.mxu1 %v3438_v47  ;;  %v2839_v35 = vand.u32 4294901760, %v928_v59  ;;  %v2855_v14 = vsub.f32 %v933_v25, %v2780_v12  ;;  %v924_v25 = vld [vmem:[%s3215_s3 + $0x20] sm:$0xff] }
  0x77   :  { %981 = vmatprep.subr.mxu0 %v2624_v60  ;;  %1077 = vmatprep.subr.mxu1 %v1076_v36  ;;  %v1130_v36 = vand.u32 4294901760, %v2778_v5  ;;  %v2837_v60 = vand.u32 4294901760, %v930_v4  ;;  %v2852_v5 = vand.u32 4294901760, %v929_v19 }
  0x78   :  { %983 = vmatpush1.msra.mxu0 %v2616_v28  ;;  %1083 = vmatpush1.msra.mxu1 %v3450_v22  ;;  %3452 = vst [vmem:[#allocation13_spill] sm:$0xff] %v2839_v35  ;;  %v1124_v28 = vand.u32 4294901760, %v2791_v0  ;;  %v2850_v22 = vsub.f32 %v2747_v17, %v3453_v55  ;;  %3454 = vst [vmem:[#allocation14_spill] sm:$0xff] %v2855_v14  ;;  %v3456_v0 = vand.u32 4294901760, %v2720_v15  ;;  %v2867_v55 = vand.u32 4294901760, %v926_v10 }
  0x79   :  { %3451 = vst [vmem:[#allocation24_spill] sm:$0xff] %v2837_v60  ;;  %985 = vmatprep.subr.mxu0 %v2644_v6  ;;  %1089 = vmatprep.subr.mxu1 %v1088_v8  ;;  %v1136_v6 = vand.u32 4294901760, %v2808_v30  ;;  %v1142_v8 = vand.u32 4294901760, %v2816_v49  ;;  %v2876_v30 = vsub.f32 %v2767_v41, %v3457_v16  ;;  %v2878_v49 = vand.u32 4294901760, %v927_v23  ;;  %v922_v41 = vld [vmem:[%s3215_s3 + $0x10] sm:$0xff] }
  0x7a   :  { %987 = vmatpush1.msra.mxu0 %v2626_v1  ;;  %1095 = vmatpush1.msra.mxu1 %v3455_v24  ;;  %v2865_v33 = vsub.f32 %v2720_v15, %v3456_v0  ;;  %v925_v0 = vld [vmem:[%s3215_s3 + $0x28] sm:$0xff]  ;;  %v2885_v1 = vsub.f32 %v931_v53, %v2824_v32  ;;  %v2892_v16 = vsub.f32 %v928_v59, %v2839_v35  ;;  %v1148_v53 = vand.u32 4294901760, %v2850_v22 }
  0x7b   :  { %989 = vmatprep.subr.mxu0 %v2679_v52  ;;  %1101 = vmatprep.subr.mxu1 %v1100_v57  ;;  %v2889_v57 = vsub.f32 %v930_v4, %v2837_v60  ;;  %v3459_v52 = vand.u32 4294901760, %v2773_v51  ;;  %v923_v4 = vld [vmem:[%s3215_s3 + $0x18] sm:$0xff]  ;;  %v2907_v59 = vsub.f32 %v929_v19, %v2852_v5  ;;  %v2914_v22 = vand.u32 4294901760, %v925_v0 }
  0x7c   :  { %991 = vmatpush1.msra.mxu0 %v2668_v61  ;;  %1107 = vmatpush1.msra.mxu1 %v1106_v9  ;;  %3458 = vst [vmem:[#allocation26_spill] sm:$0xff] %v2892_v16  ;;  %v2901_v9 = vand.u32 4294901760, %v924_v25  ;;  %v1160_v19 = vand.u32 4294901760, %v2876_v30  ;;  %v2930_v61 = vsub.f32 %v927_v23, %v2878_v49  ;;  %v3462_v23 = vand.u32 4294901760, %v2855_v14 }
  0x7d   :  { %v1165_v24 = vsub.f32 %v2773_v51, %v3459_v52  ;;  %993 = vmatprep.subr.mxu0 %v2711_v20  ;;  %1113 = vmatprep.subr.mxu1 %v1112_v63  ;;  %v1154_v52 = vand.u32 4294901760, %v2865_v33  ;;  %v2912_v63 = vsub.f32 %v926_v10, %v2867_v55  ;;  %v2936_v20 = vand.u32 4294901760, %v923_v4  ;;  %v920_v10 = vld [vmem:[%s3215_s3] sm:$0xff] }
  0x7e   :  { %995 = vmatpush1.msra.mxu0 %v2727_v18  ;;  %1119 = vmatpush1.msra.mxu1 %v1118_v54  ;;  %v3460_v54 = vand.u32 4294901760, %v2828_v21  ;;  %v921_v18 = vld [vmem:[%s3215_s3 + $0x8] sm:$0xff] }
  0x7f   :  { %997 = vmatprep.subr.mxu0 %v2764_v11  ;;  %1125 = vmatprep.subr.mxu1 %v1124_v28  ;;  %v1166_v11 = vand.u32 4294901760, %v1165_v24  ;;  %v3461_v28 = vand.u32 4294901760, %v2794_v50  ;;  %v2947_v24 = vsub.f32 %v924_v25, %v2901_v9 }
  0x80   :  { %v1171_v33 = vsub.f32 %v2828_v21, %v3460_v54  ;;  %999 = vmatpush1.msra.mxu0 %v2741_v37  ;;  %1131 = vmatpush1.msra.mxu1 %v1130_v36  ;;  %v1183_v36 = vsub.f32 %v2855_v14, %v3462_v23  ;;  %v2949_v37 = vand.u32 4294901760, %v922_v41  ;;  %v3464_v54 = vand.u32 4294901760, %v2811_v40 }
  0x81   :  { %v1177_v30 = vsub.f32 %v2794_v50, %v3461_v28  ;;  %1001 = vmatprep.subr.mxu0 %v2780_v12  ;;  %1137 = vmatprep.subr.mxu1 %v1136_v6  ;;  %3463 = vst [vmem:[#allocation27_spill] sm:$0xff] %v2947_v24  ;;  %v2956_v12 = vand.u32 4294901760, %v921_v18  ;;  %v2960_v23 = vsub.f32 %v925_v0, %v2914_v22  ;;  %v3465_v28 = vand.u32 4294901760, %v2885_v1 }
  0x82   :  { %1003 = vmatpush1.msra.mxu0 %v2753_v26  ;;  %1143 = vmatpush1.msra.mxu1 %v1142_v8  ;;  %v1189_v50 = vsub.f32 %v2811_v40, %v3464_v54  ;;  %v1172_v25 = vand.u32 4294901760, %v1171_v33  ;;  %v2966_v8 = vand.u32 4294901760, %v920_v10  ;;  %v3466_v6 = vand.u32 4294901760, %v2889_v57 }
  0x83   :  { %1005 = vmatprep.subr.mxu0 %v2824_v32  ;;  %1149 = vmatprep.subr.mxu1 %v1148_v53  ;;  %v1195_v26 = vsub.f32 %v2885_v1, %v3465_v28  ;;  %v1178_v54 = vand.u32 4294901760, %v1177_v30  ;;  %v2974_v32 = vsub.f32 %v923_v4, %v2936_v20  ;;  %v1184_v53 = vand.u32 4294901760, %v1183_v36 }
  0x84   :  { %1007 = vmatpush1.msra.mxu0 %v2837_v60  ;;  %1155 = vmatpush1.msra.mxu1 %v1154_v52  ;;  %v1201_v0 = vsub.f32 %v2889_v57, %v3466_v6  ;;  %v2978_v33 = vsub.f32 %v922_v41, %v2949_v37  ;;  %v3467_v28 = vand.u32 4294901760, %v2907_v59  ;;  %v1190_v30 = vand.u32 4294901760, %v1189_v50 }
  0x85   :  { %1009 = vmatprep.subr.mxu0 %v2852_v5  ;;  %1161 = vmatprep.subr.mxu1 %v1160_v19  ;;  %v3468_v4 = vand.u32 4294901760, %v2892_v16  ;;  %v2990_v36 = vsub.f32 %v921_v18, %v2956_v12  ;;  %v1196_v41 = vand.u32 4294901760, %v1195_v26  ;;  %v3470_v52 = vand.u32 4294901760, %v2930_v61 }
  0x86   :  { %v1207_v14 = vsub.f32 %v2907_v59, %v3467_v28  ;;  %1011 = vmatpush1.msra.mxu0 %v2839_v35  ;;  %1167 = vmatpush1.msra.mxu1 %v1166_v11  ;;  %v2994_v28 = vsub.f32 %v920_v10, %v2966_v8  ;;  %v3338_v18 = vand.u32 4294901760, %v2974_v32  ;;  %v3471_v26 = vand.u32 4294901760, %v2912_v63 }
  0x87   :  { %v1213_v6 = vsub.f32 %v2892_v16, %v3468_v4  ;;  %1013 = vmatprep.subr.mxu0 %v2878_v49  ;;  %1173 = vmatprep.subr.mxu1 %v1172_v25  ;;  %v1219_v11 = vsub.f32 %v2930_v61, %v3470_v52  ;;  %v1202_v4 = vand.u32 4294901760, %v1201_v0  ;;  %v3472_v50 = vand.u32 4294901760, %v2960_v23 }
  0x88   :  { %3469 = vst [vmem:[#allocation28_spill] sm:$0xff] %v2994_v28  ;;  %1015 = vmatpush1.msra.mxu0 %v2867_v55  ;;  %1179 = vmatpush1.msra.mxu1 %v1178_v54  ;;  %v1208_v25 = vand.u32 4294901760, %v1207_v14  ;;  %v1225_v10 = vsub.f32 %v2912_v63, %v3471_v26  ;;  %v3337_v0 = vand.u32 4294901760, %v2990_v36  ;;  %v3336_v19 = vand.u32 4294901760, %v2994_v28 }
  0x89   :  { %1017 = vmatprep.subr.mxu0 %v2914_v22  ;;  %1185 = vmatprep.subr.mxu1 %v1184_v53  ;;  %v1214_v52 = vand.u32 4294901760, %v1213_v6  ;;  %v1231_v54 = vsub.f32 %v2960_v23, %v3472_v50  ;;  %v1220_v14 = vand.u32 4294901760, %v1219_v11  ;;  %v3473_v53 = vand.u32 4294901760, %v2947_v24 }
  0x8a   :  { %1019 = vmatpush1.msra.mxu0 %v2901_v9  ;;  %1191 = vmatpush1.msra.mxu1 %v1190_v30  ;;  %v1243_v30 = vsub.f32 %v2974_v32, %v3338_v18  ;;  %v1226_v6 = vand.u32 4294901760, %v1225_v10  ;;  %v3475_v10 = vld [vmem:[#allocation25_spill] sm:$0xff]  ;;  %v3491_v18 = vld [vmem:[#allocation23_spill] sm:$0xff] }
  0x8b   :  { %1021 = vmatprep.subr.mxu0 %v2936_v20  ;;  %1197 = vmatprep.subr.mxu1 %v1196_v41  ;;  %v1237_v26 = vsub.f32 %v2947_v24, %v3473_v53  ;;  %v3474_v41 = vand.u32 4294901760, %v2978_v33  ;;  %v1232_v50 = vand.u32 4294901760, %v1231_v54 }
  0x8c   :  { %1023 = vmatpush1.msra.mxu0 %v2949_v37  ;;  %1203 = vmatpush1.msra.mxu1 %v1202_v4  ;;  %v1255_v4 = vsub.f32 %v2990_v36, %v3337_v0  ;;  %v3490_v0 = vld [vmem:[#allocation15_spill] sm:$0xff] }
  0x8d   :  { %1025 = vmatprep.subr.mxu0 %v2956_v12  ;;  %1209 = vmatprep.subr.mxu1 %v1208_v25  ;;  %v1249_v11 = vsub.f32 %v2978_v33, %v3474_v41  ;;  %v1238_v53 = vand.u32 4294901760, %v1237_v26  ;;  %v1261_v25 = vsub.f32 %v2994_v28, %v3336_v19  ;;  %v1244_v41 = vand.u32 4294901760, %v1243_v30  ;;  %v3476_v26 = vld [vmem:[#allocation18_spill] sm:$0xff]  ;;  %v3477_v30 = vld [vmem:[#allocation19_spill] sm:$0xff]  ;;  %v3489_v19 = vld [vmem:[#allocation17_spill] sm:$0xff] }
  0x8e   :  { %1027 = vmatpush1.msra.mxu0 %v2966_v8  ;;  %1215 = vmatpush1.msra.mxu1 %v1214_v52  ;;  %v1256_v54 = vand.u32 4294901760, %v1255_v4  ;;  %v3481_v4 = vld [vmem:[#allocation3_spill] sm:$0xff] }
  0x8f   :  { %1060 = vmatprep.mubr.f32.mxu0 %v3376_v38  ;;  %1221 = vmatprep.subr.mxu1 %v1220_v14  ;;  %v1250_v52 = vand.u32 4294901760, %v1249_v11  ;;  %v1262_v14 = vand.u32 4294901760, %v1261_v25  ;;  %v3479_v11 = vld [vmem:[#allocation4_spill] sm:$0xff]  ;;  %v3483_v25 = vld [vmem:[#allocation6_spill] sm:$0xff] }
  0x90   :  { %1306 = vmatprep.subr.mxu0 %v2558_v29  ;;  %1066 = vmatmul.mubr.f32.vlgmr.msra.gmra.mxu0 %v3475_v10  ;;  %v3484_v10 = vld [vmem:[#allocation5_spill] sm:$0xff] }
  0x91   :  { %1227 = vmatpush1.msra.mxu1 %v1226_v6  ;;  %1309 = vmatpush1.msra.mxu0 %v2550_v31  ;;  %v3478_v6 = vld [vmem:[#allocation2_spill] sm:$0xff] }
  0x92   :  { %1233 = vmatprep.subr.mxu1 %v1232_v50  ;;  %1312 = vmatprep.subr.mxu0 %v2593_v45  ;;  %v3480_v50 = vld [vmem:[#allocation11_spill] sm:$0xff] }
  0x93   :  { %1239 = vmatpush1.msra.mxu1 %v1238_v53  ;;  %1315 = vmatpush1.msra.mxu0 %v2564_v39  ;;  %v3482_v53 = vld [vmem:[#allocation14_spill] sm:$0xff] }
  0x94   :  { %1245 = vmatprep.subr.mxu1 %v1244_v41  ;;  %1318 = vmatprep.subr.mxu0 %v2608_v3  ;;  %v3485_v41 = vld [vmem:[#allocation8_spill] sm:$0xff] }
  0x95   :  { %1251 = vmatpush1.msra.mxu1 %v1250_v52  ;;  %1321 = vmatpush1.msra.mxu0 %v2614_v42  ;;  %v3486_v52 = vld [vmem:[#allocation7_spill] sm:$0xff] }
  0x96   :  { %1257 = vmatprep.subr.mxu1 %v1256_v54  ;;  %1324 = vmatprep.subr.mxu0 %v2660_v34  ;;  %v3487_v54 = vld [vmem:[#allocation9_spill] sm:$0xff] }
  0x97   :  { %1263 = vmatpush1.msra.mxu1 %v1262_v14  ;;  %1296 = vmatprep.mubr.f32.mxu1 %v3376_v38  ;;  %v3488_v14 = vld [vmem:[#allocation10_spill] sm:$0xff] }
  0x98   :  { %1327 = vmatpush1.msra.mxu0 %v2622_v46  ;;  %1298 = vmatmul.mubr.f32.vlgmr.msra.gmra.mxu1 %v3438_v47  ;;  %v3492_v47 = vld [vmem:[#allocation16_spill] sm:$0xff] }
  0x99   :  { %1330 = vmatprep.subr.mxu0 %v2686_v48  ;;  %1442 = vmatprep.subr.mxu1 %v2522_v13 }
  0x9a   :  { %1333 = vmatpush1.msra.mxu0 %v2666_v62  ;;  %1444 = vmatpush1.msra.mxu1 %v2524_v43 }
  0x9b   :  { %1336 = vmatprep.subr.mxu0 %v2701_v7  ;;  %1446 = vmatprep.subr.mxu1 %v2552_v58 }
  0x9c   :  { %1339 = vmatpush1.msra.mxu0 %v2677_v27  ;;  %1448 = vmatpush1.msra.mxu1 %v2532_v44 }
  0x9d   :  { %1342 = vmatprep.subr.mxu0 %v2747_v17  ;;  %1450 = vmatprep.subr.mxu1 %v2566_v2 }
  0x9e   :  { %1345 = vmatpush1.msra.mxu0 %v2720_v15  ;;  %1452 = vmatpush1.msra.mxu1 %v2571_v56 }
  0x9f   :  { %1348 = vmatprep.subr.mxu0 %v3476_v26  ;;  %1454 = vmatprep.subr.mxu1 %v3477_v30 }
  0xa0   :  { %1351 = vmatpush1.msra.mxu0 %v2773_v51  ;;  %1456 = vmatpush1.msra.mxu1 %v3478_v6 }
  0xa1   :  { %1354 = vmatprep.subr.mxu0 %v2828_v21  ;;  %1458 = vmatprep.subr.mxu1 %v3479_v11 }
  0xa2   :  { %1357 = vmatpush1.msra.mxu0 %v3480_v50  ;;  %1460 = vmatpush1.msra.mxu1 %v3481_v4 }
  0xa3   :  { %1360 = vmatprep.subr.mxu0 %v3482_v53  ;;  %1462 = vmatprep.subr.mxu1 %v3483_v25 }
  0xa4   :  { %1363 = vmatpush1.msra.mxu0 %v2811_v40  ;;  %1464 = vmatpush1.msra.mxu1 %v3484_v10 }
  0xa5   :  { %1366 = vmatprep.subr.mxu0 %v2885_v1  ;;  %1466 = vmatprep.subr.mxu1 %v3485_v41 }
  0xa6   :  { %1369 = vmatpush1.msra.mxu0 %v2889_v57  ;;  %1468 = vmatpush1.msra.mxu1 %v3486_v52 }
  0xa7   :  { %1372 = vmatprep.subr.mxu0 %v2907_v59  ;;  %1470 = vmatprep.subr.mxu1 %v3487_v54 }
  0xa8   :  { %1375 = vmatpush1.msra.mxu0 %v2892_v16  ;;  %1472 = vmatpush1.msra.mxu1 %v3488_v14  ;;  %v3493_v16 = vld [vmem:[#allocation12_spill] sm:$0xff] }
  0xa9   :  { %1378 = vmatprep.subr.mxu0 %v2930_v61  ;;  %1474 = vmatprep.subr.mxu1 %v3489_v19 }
  0xaa   :  { %1381 = vmatpush1.msra.mxu0 %v2912_v63  ;;  %1476 = vmatpush1.msra.mxu1 %v3490_v0 }
  0xab   :  { %1384 = vmatprep.subr.mxu0 %v2960_v23  ;;  %1478 = vmatprep.subr.mxu1 %v3491_v18 }
  0xac   :  { %1387 = vmatpush1.msra.mxu0 %v2947_v24  ;;  %1480 = vmatpush1.msra.mxu1 %v3492_v47  ;;  %v3494_v24 = vld [vmem:[#allocation21_spill] sm:$0xff] }
  0xad   :  { %1390 = vmatprep.subr.mxu0 %v2974_v32  ;;  %1482 = vmatprep.subr.mxu1 %v3493_v16  ;;  %v3495_v16 = vand.u32 4294901760, %v2558_v29  ;;  %v3499_v29 = vand.u32 4294901760, %v2608_v3  ;;  %v3504_v3 = vand.u32 4294901760, %v2686_v48  ;;  %v3508_v48 = vand.u32 4294901760, %v2747_v17 }
  0xae   :  { %1393 = vmatpush1.msra.mxu0 %v2978_v33  ;;  %1484 = vmatpush1.msra.mxu1 %v2837_v60  ;;  %v3496_v60 = vand.u32 4294901760, %v2550_v31  ;;  %v3500_v31 = vand.u32 4294901760, %v2614_v42  ;;  %v3505_v42 = vand.u32 4294901760, %v2666_v62  ;;  %v3517_v17 = vand.u32 4294901760, %v2889_v57 }
  0xaf   :  { %1396 = vmatprep.subr.mxu0 %v2990_v36  ;;  %1486 = vmatprep.subr.mxu1 %v2852_v5  ;;  %v3518_v62 = vand.u32 4294901760, %v2907_v59  ;;  %v3528_v59 = vand.u32 4294901760, %v2978_v33 }
  0xb0   :  { %1399 = vmatpush1.msra.mxu0 %v2994_v28  ;;  %1432 = vmatprep.mubr.f32.mxu0 %v3376_v38  ;;  %v3497_v28 = vand.u32 4294901760, %v2593_v45  ;;  %v3501_v45 = vand.u32 4294901760, %v2660_v34  ;;  %v3506_v34 = vand.u32 4294901760, %v2701_v7 }
  0xb1   :  { %1488 = vmatpush1.msra.mxu1 %v2839_v35  ;;  %1435 = vmatmul.mubr.f32.vlgmr.msra.gmra.mxu0 %v3494_v24  ;;  %v3498_v35 = vand.u32 4294901760, %v2564_v39  ;;  %v3502_v39 = vand.u32 4294901760, %v2622_v46  ;;  %v3507_v46 = vand.u32 4294901760, %v2677_v27  ;;  %v3519_v27 = vld [vmem:[#allocation26_spill] sm:$0xff]  ;;  %v3530_v24 = vand.u32 4294901760, %v2990_v36 }
  0xb2   :  { %1490 = vmatprep.subr.mxu1 %v2878_v49  ;;  %1550 = vmatprep.subr.mxu0 %v3495_v16  ;;  %v3520_v7 = vand.u32 4294901760, %v3519_v27  ;;  %v3527_v16 = vld [vmem:[#allocation12_spill] sm:$0xff] }
  0xb3   :  { %1492 = vmatpush1.msra.mxu1 %v2867_v55  ;;  %1554 = vmatpush1.msra.mxu0 %v3496_v60  ;;  %v3503_v60 = vld [vmem:[#allocation22_spill] sm:$0xff] }
  0xb4   :  { %1494 = vmatprep.subr.mxu1 %v2914_v22  ;;  %1558 = vmatprep.subr.mxu0 %v3497_v28 }
  0xb5   :  { %1496 = vmatpush1.msra.mxu1 %v2901_v9  ;;  %1562 = vmatpush1.msra.mxu0 %v3498_v35  ;;  %v3524_v35 = vld [vmem:[#allocation27_spill] sm:$0xff] }
  0xb6   :  { %1498 = vmatprep.subr.mxu1 %v2936_v20  ;;  %1566 = vmatprep.subr.mxu0 %v3499_v29  ;;  %v3525_v57 = vand.u32 4294901760, %v3524_v35 }
  0xb7   :  { %1500 = vmatpush1.msra.mxu1 %v2949_v37  ;;  %1570 = vmatpush1.msra.mxu0 %v3500_v31 }
  0xb8   :  { %1502 = vmatprep.subr.mxu1 %v2956_v12  ;;  %1574 = vmatprep.subr.mxu0 %v3501_v45 }
  0xb9   :  { %1504 = vmatpush1.msra.mxu1 %v2966_v8  ;;  %1537 = vmatprep.mubr.f32.mxu1 %v3376_v38 }
  0xba   :  { %1578 = vmatpush1.msra.mxu0 %v3502_v39  ;;  %1541 = vmatmul.mubr.f32.vlgmr.msra.gmra.mxu1 %v3503_v60 }
  0xbb   :  { %1582 = vmatprep.subr.mxu0 %v3504_v3  ;;  %1716 = vmatprep.subr.mxu1 %v2522_v13  ;;  %v3509_v13 = vand.u32 4294901760, %v2720_v15  ;;  %v3522_v15 = vand.u32 4294901760, %v2912_v63  ;;  %v3529_v63 = vld [vmem:[#allocation24_spill] sm:$0xff] }
  0xbc   :  { %1586 = vmatpush1.msra.mxu0 %v3505_v42  ;;  %1718 = vmatpush1.msra.mxu1 %v2524_v43  ;;  %v3510_v43 = vand.u32 4294901760, %v3476_v26 }
  0xbd   :  { %1590 = vmatprep.subr.mxu0 %v3506_v34  ;;  %1720 = vmatprep.subr.mxu1 %v2552_v58  ;;  %v3511_v58 = vand.u32 4294901760, %v2773_v51  ;;  %v3515_v51 = vand.u32 4294901760, %v2811_v40  ;;  %v3523_v40 = vand.u32 4294901760, %v2960_v23  ;;  %v3531_v23 = vld [vmem:[#allocation28_spill] sm:$0xff] }
  0xbe   :  { %1594 = vmatpush1.msra.mxu0 %v3507_v46  ;;  %1722 = vmatpush1.msra.mxu1 %v2532_v44  ;;  %v3512_v44 = vand.u32 4294901760, %v2828_v21  ;;  %v3516_v21 = vand.u32 4294901760, %v2885_v1  ;;  %v3521_v1 = vand.u32 4294901760, %v2930_v61  ;;  %v3526_v61 = vand.u32 4294901760, %v2974_v32  ;;  %v3534_v32 = vld [vmem:[#allocation20_spill] sm:$0xff] }
  0xbf   :  { %1598 = vmatprep.subr.mxu0 %v3508_v48  ;;  %1724 = vmatprep.subr.mxu1 %v2566_v2  ;;  %v3513_v2 = vand.u32 4294901760, %v3480_v50  ;;  %v53_v50 = vld [vmem:[%s3217_s2] sm:$0x3] }
  0xc0   :  { %1602 = vmatpush1.msra.mxu0 %v3509_v13  ;;  %1726 = vmatpush1.msra.mxu1 %v2571_v56  ;;  %v3514_v56 = vand.u32 4294901760, %v3482_v53 }
  0xc1   :  { %1606 = vmatprep.subr.mxu0 %v3510_v43  ;;  %1728 = vmatprep.subr.mxu1 %v3477_v30 }
  0xc2   :  { %1610 = vmatpush1.msra.mxu0 %v3511_v58  ;;  %1730 = vmatpush1.msra.mxu1 %v3478_v6 }
  0xc3   :  { %1614 = vmatprep.subr.mxu0 %v3512_v44  ;;  %1732 = vmatprep.subr.mxu1 %v3479_v11 }
  0xc4   :  { %1618 = vmatpush1.msra.mxu0 %v3513_v2  ;;  %1734 = vmatpush1.msra.mxu1 %v3481_v4 }
  0xc5   :  { %1622 = vmatprep.subr.mxu0 %v3514_v56  ;;  %1736 = vmatprep.subr.mxu1 %v3483_v25 }
  0xc6   :  { %1626 = vmatpush1.msra.mxu0 %v3515_v51  ;;  %1738 = vmatpush1.msra.mxu1 %v3484_v10 }
  0xc7   :  { %1630 = vmatprep.subr.mxu0 %v3516_v21  ;;  %1740 = vmatprep.subr.mxu1 %v3485_v41 }
  0xc8   :  { %1634 = vmatpush1.msra.mxu0 %v3517_v17  ;;  %1742 = vmatpush1.msra.mxu1 %v3486_v52 }
  0xc9   :  { %1638 = vmatprep.subr.mxu0 %v3518_v62  ;;  %1744 = vmatprep.subr.mxu1 %v3487_v54 }
  0xca   :  { %1642 = vmatpush1.msra.mxu0 %v3520_v7  ;;  %1746 = vmatpush1.msra.mxu1 %v3488_v14 }
  0xcb   :  { %1646 = vmatprep.subr.mxu0 %v3521_v1  ;;  %1748 = vmatprep.subr.mxu1 %v3489_v19  ;;  %v3532_v19 = vand.u32 4294901760, %v3531_v23 }
  0xcc   :  { %1650 = vmatpush1.msra.mxu0 %v3522_v15  ;;  %1750 = vmatpush1.msra.mxu1 %v3490_v0 }
  0xcd   :  { %1654 = vmatprep.subr.mxu0 %v3523_v40  ;;  %1752 = vmatprep.subr.mxu1 %v3491_v18 }
  0xce   :  { %1658 = vmatpush1.msra.mxu0 %v3525_v57  ;;  %1754 = vmatpush1.msra.mxu1 %v3492_v47  ;;  %v3533_v47 = vld [vmem:[#allocation13_spill] sm:$0xff] }
  0xcf   :  { %1662 = vmatprep.subr.mxu0 %v3526_v61  ;;  %1756 = vmatprep.subr.mxu1 %v3527_v16 }
  0xd0   :  { %1666 = vmatpush1.msra.mxu0 %v3528_v59  ;;  %1758 = vmatpush1.msra.mxu1 %v3529_v63 }
  0xd1   :  { %1670 = vmatprep.subr.mxu0 %v3530_v24  ;;  %1760 = vmatprep.subr.mxu1 %v2852_v5 }
  0xd2   :  { %1674 = vmatpush1.msra.mxu0 %v3532_v19  ;;  %1707 = vmatprep.mubr.f32.mxu0 %v3376_v38 }
  0xd3   :  { %1762 = vmatpush1.msra.mxu1 %v3533_v47  ;;  %1709 = vmatmul.mubr.f32.vlgmr.msra.gmra.mxu0 %v3534_v32 }
  0xd4   :  { %1764 = vmatprep.subr.mxu1 %v2878_v49  ;;  %1811 = vmatprep.mubr.f32.mxu1 %v3376_v38 }
  0xd5   :  { %1766 = vmatpush1.msra.mxu1 %v2867_v55 }
  0xd6   :  { %1768 = vmatprep.subr.mxu1 %v2914_v22  ;;  %v55_v22 = vlaneseq }
  0xd7   :  { %1770 = vmatpush1.msra.mxu1 %v2901_v9 }
  0xd8   :  { %1772 = vmatprep.subr.mxu1 %v2936_v20  ;;  %v56_v0 = vshrl.u32 %v55_v22, 7 }
  0xd9   :  { %1774 = vmatpush1.msra.mxu1 %v2949_v37 }
  0xda   :  { %1776 = vmatprep.subr.mxu1 %v2956_v12  ;;  %v952_v12 = vld [vmem:[%s3216_s4] sm:$0x3]  ;;  %v61_v6 = vsub.s32 1, %v56_v0 }
  0xdb   :  { %1778 = vmatpush1.msra.mxu1 %v2966_v8  ;;  %v57_v8 = vsub.s32 0, %v56_v0 }
  0xdc   :  { %1813 = vmatmul.mubr.f32.vlgmr.msra.gmra.mxu1 %v3534_v32  ;;  %v961_v25 = vrot.slane %v952_v12, %v61_v6  ;;  %v62_v52 = vrot.slane %v53_v50, %v61_v6 }
  0xdd   :  { %v957_v11 = vrot.slane %v952_v12, %v57_v8  ;;  %v58_v41 = vrot.slane %v53_v50, %v57_v8 }
  0xeb   :  { %v168_v5 = vpop.f32.mrf.mxu0 }
  0xec   :  { %v169_v39 = vadd.f32 %v168_v5, %v58_v41 }
  0xed   :  { %v170_v49 = vpop.f32.mrf.mxu0 }
  0xee   :  { %v171_v60 = vadd.f32 %v170_v49, %v62_v52 }
  0xf2   :  { %v400_v33 = vpop.f32.mrf.mxu1 }
  0xf3   :  { %v401_v13 = vadd.f32 %v400_v33, %v169_v39 }
  0xf4   :  { %v402_v36 = vpop.f32.mrf.mxu1 }
  0xf5   :  { %v403_v43 = vadd.f32 %v402_v36, %v171_v60 }
 0x10c   :  { %v537_v38 = vpop.f32.mrf.mxu0 }
 0x10d   :  { %v538_v56 = vadd.f32 %v537_v38, %v401_v13 }
 0x10e   :  { %v539_v55 = vpop.f32.mrf.mxu0 }
 0x10f   :  { %v540_v51 = vadd.f32 %v539_v55, %v403_v43 }
 0x114   :  { %v643_v28 = vpop.f32.mrf.mxu1 }
 0x115   :  { %v644_v27 = vadd.f32 %v643_v28, %v538_v56 }
 0x116   :  { %v645_v9 = vpop.f32.mrf.mxu1 }
 0x117   :  { %v646_v7 = vadd.f32 %v645_v9, %v540_v51 }
 0x12e   :  { %v811_v18 = vpop.f32.mrf.mxu0 }
 0x12f   :  { %v812_v35 = vadd.f32 %v811_v18, %v644_v27 }
 0x130   :  { %v813_v20 = vpop.f32.mrf.mxu0 }
 0x131   :  { %v814_v57 = vadd.f32 %v813_v20, %v646_v7 }
 0x136   :  { %v915_v26 = vpop.f32.mrf.mxu1 }
 0x137   :  { %v916_v59 = vadd.f32 %v915_v26, %v812_v35 }
 0x138   :  { %v917_v30 = vpop.f32.mrf.mxu1 }
 0x139   :  { %v918_v63 = vadd.f32 %v917_v30, %v814_v57 }
 0x150   :  { %v1067_v37 = vpop.f32.mrf.mxu0 }
 0x151   :  { %v1068_v54 = vadd.f32 %v1067_v37, %v957_v11 }
 0x152   :  { %v1069_v4 = vpop.f32.mrf.mxu0 }
 0x153   :  { %v1070_v29 = vadd.f32 %v1069_v4, %v961_v25 }
 0x158   :  { %v1299_v53 = vpop.f32.mrf.mxu1 }
 0x159   :  { %v1300_v3 = vadd.f32 %v1299_v53, %v1068_v54 }
 0x15a   :  { %v1301_v14 = vpop.f32.mrf.mxu1 }
 0x15b   :  { %v1302_v34 = vadd.f32 %v1301_v14, %v1070_v29 }
 0x171   :  { %v1436_v10 = vpop.f32.mrf.mxu0 }
 0x172   :  { %v1437_v46 = vadd.f32 %v1436_v10, %v1300_v3 }
 0x173   :  { %v1438_v31 = vpop.f32.mrf.mxu0 }
 0x174   :  { %v1439_v58 = vadd.f32 %v1438_v31, %v1302_v34 }
 0x17a   :  { %v1542_v45 = vpop.f32.mrf.mxu1 }
 0x17b   :  { %v1543_v44 = vadd.f32 %v1542_v45, %v1437_v46 }
 0x17c   :  { %v1544_v48 = vpop.f32.mrf.mxu1 }
 0x17d   :  { %v1545_v21 = vadd.f32 %v1544_v48, %v1439_v58 }
 0x193   :  { %v1710_v42 = vpop.f32.mrf.mxu0 }
 0x194   :  { %v1711_v17 = vadd.f32 %v1710_v42, %v1543_v44 }
 0x195   :  { %v1712_v2 = vpop.f32.mrf.mxu0 }
 0x196   :  { %v1713_v1 = vadd.f32 %v1712_v2, %v1545_v21 }
 0x19c   :  { %v1814_v62 = vpop.f32.mrf.mxu1 }
 0x19d   :  { %v1815_v15 = vadd.f32 %v1814_v62, %v1711_v17 }
 0x19e   :  { %v1816_v40 = vpop.f32.mrf.mxu1 }
 0x19f   :  { %v1819_v61 = vmax.f32 %v1815_v15, 0.0  ;;  %v1817_v16 = vadd.f32 %v1816_v40, %v1713_v1 }
 0x1a1   :  { %v1820_v24 = vmax.f32 %v1817_v16, 0.0  ;;  %v1821_v23 = vadd.f32 %v1819_v61, %v916_v59 }
 0x1a3   :  { %v1822_v19 = vadd.f32 %v1820_v24, %v918_v63 }
 0x1a5   :  { %v1825_v47 = vcombine.low %v1821_v23, %v1822_v19 }
 0x1a7   :  { %1839 = vst.sshfl [vmem:[%s3218_s5] sm:$0x33 pattern:$0x76325410] %v1825_v47 }

</bundles_post_ra>
